<compile_context>
chip_gen: v6e
topology: v6e:2x2x1
jax: 0.10.0
libtpu: 0.0.40
codegen_flags: <defaults>
</compile_context>

<pallas_src>
import functools

import jax
import jax.numpy as jnp
from jax import lax
from jax.experimental import pallas as pl
from jax.experimental.pallas import tpu as pltpu


def _round_up(x, m):
    return (x + m - 1) // m * m


def _decoder_kernel(E, TC, faithful_alignment,
                    x_ref,                                   # (TC, B, E) per-chunk embedded tokens
                    h0_ref, c0_ref, ctx_ref,                 # (B, E) each (ctx = relu(sum_s y))
                    wa_ref, ba_ref,                          # (2E, S), (1, S)   alignment (optional)
                    wg_ref, bg_ref,                          # (3E, 4E), (1, 4E) fused LSTM gates
                    wlin_ref, blin_ref,                      # (E, Vp), (1, Vp)  output projection
                    out_ref,                                 # (TC, B, Vp) logits
                    hout_ref, cout_ref,                      # (B, E) final state
                    h_s, c_s):                               # VMEM scratch: state across chunks
    chunk = pl.program_id(0)

    @pl.when(chunk == 0)
    def _init():
        h_s[...] = h0_ref[...]
        c_s[...] = c0_ref[...]

    # Residents loaded once per chunk (weights stay in VMEM across the whole grid).
    ctx_base = ctx_ref[...]
    wg = wg_ref[...]
    bg = bg_ref[...]
    wlin = wlin_ref[...]
    blin = blin_ref[...]
    mdt = wg.dtype                                           # MXU operand dtype (f32 or bf16)

    def step(t_local, carry):
        h, c = carry
        x = x_ref[t_local]                                   # (B, E) dynamic leading-axis read

        # --- attention context ----------------------------------------------------------
        # torch nn.Softmax(dim=1) acts on the size-1 time axis -> weights are exactly 1,
        # so bmm(attn, y) == sum_s y (precomputed).  The faithful path keeps the alignment
        # Linear only as a NaN/Inf propagation guard for exact PyTorch parity.
        if faithful_alignment:
            xh = jnp.concatenate([x, h], axis=-1).astype(wa_ref.dtype)          # (B, 2E)
            align = (jnp.dot(xh, wa_ref[...], preferred_element_type=jnp.float32)
                     + ba_ref[...])                                             # (B, S)
            ctx = ctx_base + jnp.sum(align * 0.0, axis=-1, keepdims=True)       # NaN guard
        else:
            ctx = ctx_base

        # --- single fused LSTM gate matmul: [x | ctx | h] @ (3E,4E) + b, gates i|f|g|o ---
        inp = jnp.concatenate([x, ctx, h], axis=-1).astype(mdt)                 # (B, 3E)
        gates = jnp.dot(inp, wg, preferred_element_type=jnp.float32) + bg       # (B, 4E) f32
        i_g = jax.nn.sigmoid(gates[:, :E])
        f_g = jax.nn.sigmoid(gates[:, E:2 * E])
        g_g = jnp.tanh(gates[:, 2 * E:3 * E])
        o_g = jax.nn.sigmoid(gates[:, 3 * E:])
        c_new = f_g * c + i_g * g_g
        h_new = o_g * jnp.tanh(c_new)

        # --- output projection Linear(E -> Vp), lane-dense store -------------------------
        logits = (jnp.dot(h_new.astype(mdt), wlin, preferred_element_type=jnp.float32)
                  + blin)                                                       # (B, Vp)
        out_ref[t_local] = logits
        return h_new, c_new

    h_f, c_f = lax.fori_loop(0, TC, step, (h_s[...], c_s[...]), unroll=(TC <= 8))

    h_s[...] = h_f
    c_s[...] = c_f
    hout_ref[...] = h_f
    cout_ref[...] = c_f


def prepare_params(raw, *, mxu_dtype=jnp.float32):
    """One-time prep: transposes, gate fusion into (3E,4E), bias fusion, V lane padding."""
    E = raw["emb"].shape[1]
    V = raw["w_lin"].shape[0]
    Vp = _round_up(V, 128)
    f32 = jnp.float32
    # fused gate weight: rows = [x | context | h], cols = i|f|g|o (PyTorch order)
    w_gates = jnp.concatenate([raw["w_ih"].T, raw["w_hh"].T], axis=0)            # (3E, 4E)
    w_lin_p = jnp.pad(raw["w_lin"].T, ((0, 0), (0, Vp - V)))                     # (E, Vp)
    b_lin_p = jnp.pad(raw["b_lin"], (0, Vp - V))[None, :]                        # (1, Vp)
    return {
        "emb":  raw["emb"].astype(f32),                      # (V, E) — gathered in the wrapper
        "wa":   raw["w_align"].T.astype(mxu_dtype),          # (2E, S)
        "ba":   raw["b_align"].astype(f32)[None, :],         # (1, S)
        "wg":   w_gates.astype(mxu_dtype),                   # (3E, 4E)
        "bg":   (raw["b_ih"] + raw["b_hh"]).astype(f32)[None, :],   # (1, 4E)
        "wlin": w_lin_p.astype(mxu_dtype),                    # (E, Vp)
        "blin": b_lin_p.astype(f32),                          # (1, Vp)
        "E": E, "V": V, "Vp": Vp,
    }


def attention_decoder_decode(x_tokens, y, h, c, params, *,
                             faithful_alignment=False, t_chunk=None):
    """Applies AttentionDecoderLSTM.forward once per column of x_tokens (teacher forcing),
    carrying (h, c) across steps inside a single pallas_call.  T == 1 is the module's
    forward.  t_chunk (must divide T) splits the decode into pipelined output chunks."""
    B, T = x_tokens.shape
    E, V, Vp = params["E"], params["V"], params["Vp"]
    S = y.shape[1]

    TC = T if t_chunk is None else t_chunk
    assert T % TC == 0, "t_chunk must divide T (pad the token stream upstream)"
    n_chunks = T // TC

    # ---- one-time, step-invariant precompute in plain XLA (outside the kernel) ----------
    # TODO(synk): train-mode dropout mask/scaling not implemented (inference semantics).
    x_emb = jnp.take(params["emb"], x_tokens.astype(jnp.int32), axis=0)   # (B, T, E)
    x_emb = jnp.transpose(x_emb, (1, 0, 2))                               # (T, B, E)
    ctx = jax.nn.relu(jnp.sum(y.astype(jnp.float32), axis=1))             # (B, E) == bmm(1s, y)
    h0 = h[0].astype(jnp.float32)
    c0 = c[0].astype(jnp.float32)

    full2 = lambda cix: (0, 0)
    grid_spec = pltpu.PrefetchScalarGridSpec(
        num_scalar_prefetch=0,
        grid=(n_chunks,),
        in_specs=[
            pl.BlockSpec((TC, B, E), lambda cix: (cix, 0, 0)),   # embedded tokens (per chunk)
            pl.BlockSpec((B, E), full2),                         # h0
            pl.BlockSpec((B, E), full2),                         # c0
            pl.BlockSpec((B, E), full2),                         # precomputed context
            pl.BlockSpec((2 * E, S), full2),                     # fused alignment W
            pl.BlockSpec((1, S), full2),                         # alignment bias
            pl.BlockSpec((3 * E, 4 * E), full2),                 # fused gate W
            pl.BlockSpec((1, 4 * E), full2),                     # fused gate bias
            pl.BlockSpec((E, Vp), full2),                        # output Linear W (lane padded)
            pl.BlockSpec((1, Vp), full2),                        # output Linear b
        ],
        out_specs=[
            pl.BlockSpec((TC, B, Vp), lambda cix: (cix, 0, 0)),  # logits (lane-dense)
            pl.BlockSpec((B, E), full2),                         # h_final
            pl.BlockSpec((B, E), full2),                         # c_final
        ],
        scratch_shapes=[pltpu.VMEM((B, E), jnp.float32),         # recurrent h across chunks
                        pltpu.VMEM((B, E), jnp.float32)],        # recurrent c across chunks
    )

    kernel = functools.partial(_decoder_kernel, E, TC, faithful_alignment)
    logits, h_out, c_out = pl.pallas_call(
        kernel,
        out_shape=(jax.ShapeDtypeStruct((T, B, Vp), jnp.float32),
                   jax.ShapeDtypeStruct((B, E), jnp.float32),
                   jax.ShapeDtypeStruct((B, E), jnp.float32)),
        grid_spec=grid_spec,
        compiler_params=pltpu.CompilerParams(
            dimension_semantics=("arbitrary",)),                 # time chunks are a recurrence
    )(x_emb, h0, c0, ctx,
      params["wa"], params["ba"], params["wg"], params["bg"],
      params["wlin"], params["blin"])

    out = jnp.transpose(logits[:, :, :V], (1, 0, 2))             # (B, T, V), padding sliced off
    return out, (h_out[None], c_out[None])


def attention_decoder_step(x_tokens, y, h, c, params, **kw):
    """Exact analogue of AttentionDecoderLSTM.forward(x, y, (h, c)) for x of shape (B, 1)."""
    return attention_decoder_decode(x_tokens, y, h, c, params, **kw)


# ----------------------------- pure-JAX reference --------------------------------------------
def _reference_step(tok, y, h, c, raw):
    """Transcription of the PyTorch forward (eval mode) for one step; tok has shape (B,)."""
    E = raw["emb"].shape[1]
    x = jnp.take(raw["emb"], tok, axis=0)[:, None, :]            # (B,1,E)
    hv = h[0][:, None, :]
    a = jnp.einsum("bte,se->bts", jnp.concatenate([x, hv], -1),
                   raw["w_align"]) + raw["b_align"]              # (B,1,S)
    aw = jax.nn.softmax(a, axis=1)
    ctx = jax.nn.relu(jnp.einsum("bts,bse->bte", aw, y))         # (B,1,E)
    inp = jnp.concatenate([x, ctx], -1)[:, 0]                    # (B,2E)
    gates = (inp @ raw["w_ih"].T + h[0] @ raw["w_hh"].T
             + raw["b_ih"] + raw["b_hh"])
    i, f, g, o = (gates[:, :E], gates[:, E:2 * E],
                  gates[:, 2 * E:3 * E], gates[:, 3 * E:])
    c_new = jax.nn.sigmoid(f) * c[0] + jax.nn.sigmoid(i) * jnp.tanh(g)
    h_new = jax.nn.sigmoid(o) * jnp.tanh(c_new)
    out = h_new @ raw["w_lin"].T + raw["b_lin"]
    return out[:, None, :], (h_new[None], c_new[None])


def _reference_decode(x_tokens, y, h, c, raw):
    outs = []
    for t in range(x_tokens.shape[1]):
        o, (h, c) = _reference_step(x_tokens[:, t], y, h, c, raw)
        outs.append(o)
    return jnp.concatenate(outs, axis=1), (h, c)


if __name__ == "__main__":
    V, E, S, B, T = 64, 32, 8, 2, 4

    key = jax.random.PRNGKey(0)
    ks = jax.random.split(key, 12)
    scale = 0.1
    raw = {
        "emb":     scale * jax.random.normal(ks[0], (V, E), jnp.float32),
        "w_align": scale * jax.random.normal(ks[1], (S, 2 * E), jnp.float32),
        "b_align": scale * jax.random.normal(ks[2], (S,), jnp.float32),
        "w_ih":    scale * jax.random.normal(ks[3], (4 * E, 2 * E), jnp.float32),
        "w_hh":    scale * jax.random.normal(ks[4], (4 * E, E), jnp.float32),
        "b_ih":    scale * jax.random.normal(ks[5], (4 * E,), jnp.float32),
        "b_hh":    scale * jax.random.normal(ks[6], (4 * E,), jnp.float32),
        "w_lin":   scale * jax.random.normal(ks[7], (V, E), jnp.float32),
        "b_lin":   scale * jax.random.normal(ks[8], (V,), jnp.float32),
    }
    params = prepare_params(raw)                                  # exact (f32 MXU operands)

    x_tokens = jax.random.randint(ks[9], (B, T), 0, V, dtype=jnp.int32)
    y = jax.random.normal(ks[10], (B, S, E), jnp.float32)         # encoder outputs
    hc = jax.random.normal(ks[11], (2, 1, B, E), jnp.float32)
    h, c = hc[0], hc[1]                                           # (1, B, E) each

    # 1) single decode step == the module's forward (x of shape (B, 1))
    out1, (h1, c1) = attention_decoder_step(x_tokens[:, :1], y, h, c, params)
    jax.block_until_ready((out1, h1, c1))
    ref1, (rh1, rc1) = _reference_step(x_tokens[:, 0], y, h, c, raw)
    assert out1.shape == (B, 1, V) and h1.shape == (1, B, E) and c1.shape == (1, B, E)
    assert jnp.allclose(out1, ref1, rtol=1e-5, atol=1e-5)
    assert jnp.allclose(h1, rh1, rtol=1e-5, atol=1e-5)
    assert jnp.allclose(c1, rc1, rtol=1e-5, atol=1e-5)

    # 2) fused multi-step teacher-forced decode (single chunk, in-kernel loop over T)
    outT, (hT, cT) = attention_decoder_decode(x_tokens, y, h, c, params)
    jax.block_until_ready((outT, hT, cT))
    refT, (rhT, rcT) = _reference_decode(x_tokens, y, h, c, raw)
    assert outT.shape == (B, T, V)
    assert jnp.allclose(outT, refT, rtol=1e-4, atol=1e-4)
    assert jnp.allclose(hT, rhT, rtol=1e-4, atol=1e-4)
    assert jnp.allclose(cT, rcT, rtol=1e-4, atol=1e-4)

    # 3) faithful-alignment path (NaN/Inf-parity guard) matches too on finite inputs
    outF, (hF, cF) = attention_decoder_decode(x_tokens, y, h, c, params,
                                              faithful_alignment=True)
    jax.block_until_ready((outF, hF, cF))
    assert jnp.allclose(outF, refT, rtol=1e-4, atol=1e-4)
    assert jnp.allclose(hF, rhT, rtol=1e-4, atol=1e-4)

    # 4) longer decode split into chunks (pipelined writeback, state carried in scratch)
    T2 = 16
    x_tokens2 = jax.random.randint(jax.random.PRNGKey(1), (B, T2), 0, V, dtype=jnp.int32)
    outL, (hL, cL) = attention_decoder_decode(x_tokens2, y, h, c, params, t_chunk=8)
    jax.block_until_ready((outL, hL, cL))
    refL, (rhL, rcL) = _reference_decode(x_tokens2, y, h, c, raw)
    assert outL.shape == (B, T2, V)
    assert jnp.allclose(outL, refL, rtol=1e-4, atol=1e-4)
    assert jnp.allclose(hL, rhL, rtol=1e-4, atol=1e-4)
    assert jnp.allclose(cL, rcL, rtol=1e-4, atol=1e-4)

    # 5) bf16 MXU-operand variant (v6e/v7x): elementwise math stays f32, loose tolerance
    params_bf16 = prepare_params(raw, mxu_dtype=jnp.bfloat16)
    outB, (hB, cB) = attention_decoder_decode(x_tokens, y, h, c, params_bf16)
    jax.block_until_ready((outB, hB, cB))
    assert jnp.allclose(outB, refT, rtol=2e-2, atol=2e-2)
    assert jnp.allclose(hB, rhT, rtol=2e-2, atol=2e-2)

    print("KERNEL_OK")
</pallas_src>

<mosaic_0001>
module attributes {stable_mosaic.version = 11 : i64} {
  func.func @_decoder_kernel(%arg0: i32, %arg1: memref<1x2x32xf32, #tpu.memory_space<vmem>>, %arg2: memref<2x32xf32, #tpu.memory_space<vmem>>, %arg3: memref<2x32xf32, #tpu.memory_space<vmem>>, %arg4: memref<2x32xf32, #tpu.memory_space<vmem>>, %arg5: memref<64x8xf32, #tpu.memory_space<vmem>>, %arg6: memref<1x8xf32, #tpu.memory_space<vmem>>, %arg7: memref<96x128xf32, #tpu.memory_space<vmem>>, %arg8: memref<1x128xf32, #tpu.memory_space<vmem>>, %arg9: memref<32x128xf32, #tpu.memory_space<vmem>>, %arg10: memref<1x128xf32, #tpu.memory_space<vmem>>, %arg11: memref<1x2x128xf32, #tpu.memory_space<vmem>>, %arg12: memref<2x32xf32, #tpu.memory_space<vmem>>, %arg13: memref<2x32xf32, #tpu.memory_space<vmem>>, %arg14: memref<2x32xf32, #tpu.memory_space<vmem>>, %arg15: memref<2x32xf32, #tpu.memory_space<vmem>>) attributes {dimension_semantics = [#tpu.dimension_semantics<arbitrary>], iteration_bounds = array<i64: 1>, scalar_prefetch = 0 : i64, scratch_operands = 2 : i64, tpu.core_type = #tpu.core_type<tc>, window_params = [{transform_indices = @transform_0, window_bounds = array<i64: 1, 2, 32>}, {pipeline_mode = #tpu.pipeline_mode<synchronous>, transform_indices = @transform_1, window_bounds = array<i64: 2, 32>}, {pipeline_mode = #tpu.pipeline_mode<synchronous>, transform_indices = @transform_2, window_bounds = array<i64: 2, 32>}, {pipeline_mode = #tpu.pipeline_mode<synchronous>, transform_indices = @transform_3, window_bounds = array<i64: 2, 32>}, {pipeline_mode = #tpu.pipeline_mode<synchronous>, transform_indices = @transform_4, window_bounds = array<i64: 64, 8>}, {pipeline_mode = #tpu.pipeline_mode<synchronous>, transform_indices = @transform_5, window_bounds = array<i64: 1, 8>}, {pipeline_mode = #tpu.pipeline_mode<synchronous>, transform_indices = @transform_6, window_bounds = array<i64: 96, 128>}, {pipeline_mode = #tpu.pipeline_mode<synchronous>, transform_indices = @transform_7, window_bounds = array<i64: 1, 128>}, {pipeline_mode = #tpu.pipeline_mode<synchronous>, transform_indices = @transform_8, window_bounds = array<i64: 32, 128>}, {pipeline_mode = #tpu.pipeline_mode<synchronous>, transform_indices = @transform_9, window_bounds = array<i64: 1, 128>}, {transform_indices = @transform_10, window_bounds = array<i64: 1, 2, 128>}, {pipeline_mode = #tpu.pipeline_mode<synchronous>, transform_indices = @transform_11, window_bounds = array<i64: 2, 32>}, {pipeline_mode = #tpu.pipeline_mode<synchronous>, transform_indices = @transform_12, window_bounds = array<i64: 2, 32>}]} {
    %c0_i32 = arith.constant 0 : i32
    %0 = arith.cmpi eq, %arg0, %c0_i32 : i32
    %1 = arith.extui %0 : i1 to i32
    %c0_i32_0 = arith.constant 0 : i32
    %2 = arith.cmpi ne, %1, %c0_i32_0 : i32
    scf.if %2 {
      %c0_31 = arith.constant 0 : index
      %c0_32 = arith.constant 0 : index
      %53 = vector.load %arg2[%c0_31, %c0_32] : memref<2x32xf32, #tpu.memory_space<vmem>>, vector<2x32xf32>
      %c0_33 = arith.constant 0 : index
      %c0_34 = arith.constant 0 : index
      %54 = vector.load %arg14[%c0_33, %c0_34] : memref<2x32xf32, #tpu.memory_space<vmem>>, vector<2x32xf32>
      tpu.vector_store %arg14[%c0_33, %c0_34], %53 {strides = array<i32>} : memref<2x32xf32, #tpu.memory_space<vmem>>, vector<2x32xf32>,
      %c0_35 = arith.constant 0 : index
      %c0_36 = arith.constant 0 : index
      %55 = vector.load %arg3[%c0_35, %c0_36] : memref<2x32xf32, #tpu.memory_space<vmem>>, vector<2x32xf32>
      %c0_37 = arith.constant 0 : index
      %c0_38 = arith.constant 0 : index
      %56 = vector.load %arg15[%c0_37, %c0_38] : memref<2x32xf32, #tpu.memory_space<vmem>>, vector<2x32xf32>
      tpu.vector_store %arg15[%c0_37, %c0_38], %55 {strides = array<i32>} : memref<2x32xf32, #tpu.memory_space<vmem>>, vector<2x32xf32>,
    } else {
    }
    %c0 = arith.constant 0 : index
    %c0_1 = arith.constant 0 : index
    %3 = vector.load %arg4[%c0, %c0_1] : memref<2x32xf32, #tpu.memory_space<vmem>>, vector<2x32xf32>
    %c0_2 = arith.constant 0 : index
    %c0_3 = arith.constant 0 : index
    %4 = vector.load %arg7[%c0_2, %c0_3] : memref<96x128xf32, #tpu.memory_space<vmem>>, vector<96x128xf32>
    %c0_4 = arith.constant 0 : index
    %c0_5 = arith.constant 0 : index
    %5 = vector.load %arg8[%c0_4, %c0_5] : memref<1x128xf32, #tpu.memory_space<vmem>>, vector<1x128xf32>
    %c0_6 = arith.constant 0 : index
    %c0_7 = arith.constant 0 : index
    %6 = vector.load %arg9[%c0_6, %c0_7] : memref<32x128xf32, #tpu.memory_space<vmem>>, vector<32x128xf32>
    %c0_8 = arith.constant 0 : index
    %c0_9 = arith.constant 0 : index
    %7 = vector.load %arg10[%c0_8, %c0_9] : memref<1x128xf32, #tpu.memory_space<vmem>>, vector<1x128xf32>
    %c0_10 = arith.constant 0 : index
    %c0_11 = arith.constant 0 : index
    %8 = vector.load %arg14[%c0_10, %c0_11] : memref<2x32xf32, #tpu.memory_space<vmem>>, vector<2x32xf32>
    %c0_12 = arith.constant 0 : index
    %c0_13 = arith.constant 0 : index
    %9 = vector.load %arg15[%c0_12, %c0_13] : memref<2x32xf32, #tpu.memory_space<vmem>>, vector<2x32xf32>
    %c0_i32_14 = arith.constant 0 : i32
    %10 = arith.index_cast %c0_i32_14 : i32 to index
    %c0_15 = arith.constant 0 : index
    %c0_16 = arith.constant 0 : index
    %11 = vector.load %arg1[%10, %c0_15, %c0_16] : memref<1x2x32xf32, #tpu.memory_space<vmem>>, vector<1x2x32xf32>
    %12 = vector.shape_cast %11 : vector<1x2x32xf32> to vector<2x32xf32>
    %13 = tpu.concatenate %12, %3, %8 in 1 : vector<2x32xf32>, vector<2x32xf32>, vector<2x32xf32> -> vector<2x96xf32>
    %cst = arith.constant dense<0.000000e+00> : vector<2x128xf32>
    %14 = tpu.matmul %13, %4, %cst {dimension_numbers = #tpu.dot_dimension_numbers<[1], [0], [0], [1], [0, 0, 1, 1], [], []>} : vector<2x96xf32>, vector<96x128xf32>, vector<2x128xf32> -> vector<2x128xf32>
    %15 = vector.broadcast %5 : vector<1x128xf32> to vector<2x128xf32>
    %16 = arith.addf %14, %15 : vector<2x128xf32>
    %17 = vector.extract_strided_slice %16 {offsets = [0, 0], sizes = [2, 32], strides = [1, 1]} : vector<2x128xf32> to vector<2x32xf32>
    %18 = arith.negf %17 : vector<2x32xf32>
    %19 = math.exp %18 : vector<2x32xf32>
    %cst_17 = arith.constant 1.000000e+00 : f32
    %20 = vector.broadcast %cst_17 : f32 to vector<2x32xf32>
    %21 = arith.addf %20, %19 : vector<2x32xf32>
    %22 = arith.divf %20, %21 : vector<2x32xf32>
    %23 = vector.extract_strided_slice %16 {offsets = [0, 32], sizes = [2, 32], strides = [1, 1]} : vector<2x128xf32> to vector<2x32xf32>
    %24 = arith.negf %23 : vector<2x32xf32>
    %25 = math.exp %24 : vector<2x32xf32>
    %cst_18 = arith.constant 1.000000e+00 : f32
    %26 = vector.broadcast %cst_18 : f32 to vector<2x32xf32>
    %27 = arith.addf %26, %25 : vector<2x32xf32>
    %28 = arith.divf %26, %27 : vector<2x32xf32>
    %29 = vector.extract_strided_slice %16 {offsets = [0, 64], sizes = [2, 32], strides = [1, 1]} : vector<2x128xf32> to vector<2x32xf32>
    %30 = math.tanh %29 : vector<2x32xf32>
    %31 = vector.extract_strided_slice %16 {offsets = [0, 96], sizes = [2, 32], strides = [1, 1]} : vector<2x128xf32> to vector<2x32xf32>
    %32 = arith.negf %31 : vector<2x32xf32>
    %33 = math.exp %32 : vector<2x32xf32>
    %cst_19 = arith.constant 1.000000e+00 : f32
    %34 = vector.broadcast %cst_19 : f32 to vector<2x32xf32>
    %35 = arith.addf %34, %33 : vector<2x32xf32>
    %36 = arith.divf %34, %35 : vector<2x32xf32>
    %37 = arith.mulf %28, %9 : vector<2x32xf32>
    %38 = arith.mulf %22, %30 : vector<2x32xf32>
    %39 = arith.addf %37, %38 : vector<2x32xf32>
    %40 = math.tanh %39 : vector<2x32xf32>
    %41 = arith.mulf %36, %40 : vector<2x32xf32>
    %cst_20 = arith.constant dense<0.000000e+00> : vector<2x128xf32>
    %42 = tpu.matmul %41, %6, %cst_20 {dimension_numbers = #tpu.dot_dimension_numbers<[1], [0], [0], [1], [0, 0, 1, 1], [], []>} : vector<2x32xf32>, vector<32x128xf32>, vector<2x128xf32> -> vector<2x128xf32>
    %43 = vector.broadcast %7 : vector<1x128xf32> to vector<2x128xf32>
    %44 = arith.addf %42, %43 : vector<2x128xf32>
    %45 = arith.index_cast %c0_i32_14 : i32 to index
    %c0_21 = arith.constant 0 : index
    %c0_22 = arith.constant 0 : index
    %46 = vector.load %arg11[%45, %c0_21, %c0_22] : memref<1x2x128xf32, #tpu.memory_space<vmem>>, vector<1x2x128xf32>
    %47 = vector.shape_cast %46 : vector<1x2x128xf32> to vector<2x128xf32>
    %48 = vector.shape_cast %44 : vector<2x128xf32> to vector<1x2x128xf32>
    tpu.vector_store %arg11[%45, %c0_21, %c0_22], %48 {strides = array<i32>} : memref<1x2x128xf32, #tpu.memory_space<vmem>>, vector<1x2x128xf32>,
    %c1_i32 = arith.constant 1 : i32
    %c0_23 = arith.constant 0 : index
    %c0_24 = arith.constant 0 : index
    %49 = vector.load %arg14[%c0_23, %c0_24] : memref<2x32xf32, #tpu.memory_space<vmem>>, vector<2x32xf32>
    tpu.vector_store %arg14[%c0_23, %c0_24], %41 {strides = array<i32>} : memref<2x32xf32, #tpu.memory_space<vmem>>, vector<2x32xf32>,
    %c0_25 = arith.constant 0 : index
    %c0_26 = arith.constant 0 : index
    %50 = vector.load %arg15[%c0_25, %c0_26] : memref<2x32xf32, #tpu.memory_space<vmem>>, vector<2x32xf32>
    tpu.vector_store %arg15[%c0_25, %c0_26], %39 {strides = array<i32>} : memref<2x32xf32, #tpu.memory_space<vmem>>, vector<2x32xf32>,
    %c0_27 = arith.constant 0 : index
    %c0_28 = arith.constant 0 : index
    %51 = vector.load %arg12[%c0_27, %c0_28] : memref<2x32xf32, #tpu.memory_space<vmem>>, vector<2x32xf32>
    tpu.vector_store %arg12[%c0_27, %c0_28], %41 {strides = array<i32>} : memref<2x32xf32, #tpu.memory_space<vmem>>, vector<2x32xf32>,
    %c0_29 = arith.constant 0 : index
    %c0_30 = arith.constant 0 : index
    %52 = vector.load %arg13[%c0_29, %c0_30] : memref<2x32xf32, #tpu.memory_space<vmem>>, vector<2x32xf32>
    tpu.vector_store %arg13[%c0_29, %c0_30], %39 {strides = array<i32>} : memref<2x32xf32, #tpu.memory_space<vmem>>, vector<2x32xf32>,
    return
  }
  func.func @transform_0(%arg0: i32) -> (i32, i32, i32) {
    %c0_i32 = arith.constant 0 : i32
    %c0_i32_0 = arith.constant 0 : i32
    %c0_i32_1 = arith.constant 0 : i32
    return %arg0, %c0_i32, %c0_i32_0 : i32, i32, i32
  }
  func.func @transform_1(%arg0: i32) -> (i32, i32) {
    %c0_i32 = arith.constant 0 : i32
    %c0_i32_0 = arith.constant 0 : i32
    %c0_i32_1 = arith.constant 0 : i32
    return %c0_i32, %c0_i32_0 : i32, i32
  }
  func.func @transform_2(%arg0: i32) -> (i32, i32) {
    %c0_i32 = arith.constant 0 : i32
    %c0_i32_0 = arith.constant 0 : i32
    %c0_i32_1 = arith.constant 0 : i32
    return %c0_i32, %c0_i32_0 : i32, i32
  }
  func.func @transform_3(%arg0: i32) -> (i32, i32) {
    %c0_i32 = arith.constant 0 : i32
    %c0_i32_0 = arith.constant 0 : i32
    %c0_i32_1 = arith.constant 0 : i32
    return %c0_i32, %c0_i32_0 : i32, i32
  }
  func.func @transform_4(%arg0: i32) -> (i32, i32) {
    %c0_i32 = arith.constant 0 : i32
    %c0_i32_0 = arith.constant 0 : i32
    %c0_i32_1 = arith.constant 0 : i32
    return %c0_i32, %c0_i32_0 : i32, i32
  }
  func.func @transform_5(%arg0: i32) -> (i32, i32) {
    %c0_i32 = arith.constant 0 : i32
    %c0_i32_0 = arith.constant 0 : i32
    %c0_i32_1 = arith.constant 0 : i32
    return %c0_i32, %c0_i32_0 : i32, i32
  }
  func.func @transform_6(%arg0: i32) -> (i32, i32) {
    %c0_i32 = arith.constant 0 : i32
    %c0_i32_0 = arith.constant 0 : i32
    %c0_i32_1 = arith.constant 0 : i32
    return %c0_i32, %c0_i32_0 : i32, i32
  }
  func.func @transform_7(%arg0: i32) -> (i32, i32) {
    %c0_i32 = arith.constant 0 : i32
    %c0_i32_0 = arith.constant 0 : i32
    %c0_i32_1 = arith.constant 0 : i32
    return %c0_i32, %c0_i32_0 : i32, i32
  }
  func.func @transform_8(%arg0: i32) -> (i32, i32) {
    %c0_i32 = arith.constant 0 : i32
    %c0_i32_0 = arith.constant 0 : i32
    %c0_i32_1 = arith.constant 0 : i32
    return %c0_i32, %c0_i32_0 : i32, i32
  }
  func.func @transform_9(%arg0: i32) -> (i32, i32) {
    %c0_i32 = arith.constant 0 : i32
    %c0_i32_0 = arith.constant 0 : i32
    %c0_i32_1 = arith.constant 0 : i32
    return %c0_i32, %c0_i32_0 : i32, i32
  }
  func.func @transform_10(%arg0: i32) -> (i32, i32, i32) {
    %c0_i32 = arith.constant 0 : i32
    %c0_i32_0 = arith.constant 0 : i32
    %c0_i32_1 = arith.constant 0 : i32
    return %arg0, %c0_i32, %c0_i32_0 : i32, i32, i32
  }
  func.func @transform_11(%arg0: i32) -> (i32, i32) {
    %c0_i32 = arith.constant 0 : i32
    %c0_i32_0 = arith.constant 0 : i32
    %c0_i32_1 = arith.constant 0 : i32
    return %c0_i32, %c0_i32_0 : i32, i32
  }
  func.func @transform_12(%arg0: i32) -> (i32, i32) {
    %c0_i32 = arith.constant 0 : i32
    %c0_i32_0 = arith.constant 0 : i32
    %c0_i32_1 = arith.constant 0 : i32
    return %c0_i32, %c0_i32_0 : i32, i32
  }
}

</mosaic_0001>

<bundles_post_ra>
// kernel: tpu_custom_call.1
= control target key start
LH: loop header
LB: loop body
LE: loop exit
PB: predicated region body
PF: predicated region fallthrough
CT: control target
= control target key end

     0   :  { %18 = vsyncpa [#allocation5], 0  ;;  %s656_s0 = inlined_call_operand.vmem [shape: f32[1,2,32], index: 0, kind: input, shape index: {}]   ;;  %s657_s1 = inlined_call_operand.vmem [shape: f32[2,32], index: 1, kind: input, shape index: {}]   ;;  %s658_s2 = inlined_call_operand.vmem [shape: f32[2,32], index: 2, kind: input, shape index: {}]   ;;  %s659_s3 = inlined_call_operand.vmem [shape: f32[2,32], index: 3, kind: input, shape index: {}]   ;;  %s660_s4 = inlined_call_operand.vmem [shape: f32[64,8], index: 4, kind: input, shape index: {}]   ;;  %s661_s5 = inlined_call_operand.vmem [shape: f32[1,8], index: 5, kind: input, shape index: {}]   ;;  %s662_s6 = inlined_call_operand.hbm [shape: f32[96,128], index: 6, kind: input, shape index: {}]   ;;  %s663_s7 = inlined_call_operand.vmem [shape: f32[1,128], index: 7, kind: input, shape index: {}]   ;;  %s664_s8 = inlined_call_operand.vmem [shape: f32[32,128], index: 8, kind: input, shape index: {}]   ;;  %s665_s9 = inlined_call_operand.vmem [shape: f32[1,128], index: 9, kind: input, shape index: {}]   ;;  %s666_s10 = inlined_call_operand.hbm [shape: f32[1,2,128], index: 10, kind: output, shape index: {0}]   ;;  %s667_s11 = inlined_call_operand.hbm [shape: f32[2,32], index: 11, kind: output, shape index: {1}]   ;;  %s668_s12 = inlined_call_operand.hbm [shape: f32[2,32], index: 12, kind: output, shape index: {2}]  }
   0x1   :  { %19 = vsyncpa [#allocation6], 0 }
   0x2   :  { %20 = vsyncpa [#allocation9], 0  ;;  %s505_s19 = smov [#allocation4]  }
   0x3   :  { %s38_s20 = sshll.u32 %s505_s19, 4  ;;  %s39_s20 = int_to_ptr.vmem [resolvable:$true] %s38_s20 }
   0x4   :  { %s427_s21 = scalar_lea.vmem %s39_s20, 1536  ;;  %p432_p1 = scmp.lt.s32.totalorder %s39_s20, %s39_s20 }
   0x5   :  { %p428_p0 = scmp.ne.s32.totalorder %s39_s20, %s427_s21  ;;  %p433_p2 = scmp.lt.s32.totalorder %s427_s21, %s427_s21 }
   0x7   :  { %p434_p3 = por %p433_p2, %p432_p1 }
   0x9   :  { %p435_p4 = pnand %p434_p3, %p428_p0 }
   0xb   :  { %438 = shalt.err (!%p435_p4)
}
   0xc   :  { %s506_s22 = smov 128   ;;  %s507_s23 = smov 8  }
   0xd   :  { %44 = dma.hbm_to_vmem [thread:$0]  %s662_s6, 1536, %s39_s20, [#allocation5], %s506_s22, %s506_s22, %s507_s23  }
   0xe   :  { %499 = dma.done.wait [#allocation5], 1536  }
   0xf   :  { %500 = vsyncadd [#allocation5], 4294965760  ;;  %v508_v0 = vmov 0.0   ;;  %vm509_vm0 = vmmov 0   ;;  %vm59_vm1 = vcmask 254976   ;;  %v75_v3 = vld [vmem:[#allocation4 + $0x58] sm:$0xff] }
  0x10   :  { %362 = vmatprep.subr.mxu0 %v508_v0  ;;  %389 = vmatprep.subr.mxu1 %v508_v0  ;;  %v63_v1 = vld [vmem:[%s659_s3] sm:$0x3]  ;;  %s510_s6 = smov 32   ;;  %v74_v4 = vld [vmem:[#allocation4 + $0x50] sm:$0xff]  ;;  %v73_v5 = vld [vmem:[#allocation4 + $0x48] sm:$0xff]  ;;  %vm93_vm2 = vcmask 261120  }
  0x11   :  { %386 = vmatprep.mubr.msk.f32.mxu0 %vm509_vm0, %v508_v0  ;;  %397 = vmatprep.mubr.msk.f32.mxu1 %vm509_vm0, %v508_v0  ;;  %v58_v2 = vld [vmem:[%s657_s1] sm:$0x3]  ;;  %v72_v6 = vld [vmem:[#allocation4 + $0x40] sm:$0xff]  ;;  %v70_v9 = vld [vmem:[#allocation4 + $0x30] sm:$0xff]  ;;  %s511_s1 = smov 64   ;;  %vm95_vm3 = vcmask 523264  }
  0x12   :  { %86 = vrot.lane.b32.xlu0 %v63_v1, %s510_s6  ;;  %60 = vst.msk [vmem:[#allocation2] sm:$0x3] %vm59_vm1, %v58_v2  ;;  %363 = vmatpush3.msra.mxu0 %v75_v3  ;;  %v71_v7 = vld [vmem:[#allocation4 + $0x38] sm:$0xff]  ;;  %v69_v10 = vld [vmem:[#allocation4 + $0x28] sm:$0xff]  ;;  %v68_v11 = vld [vmem:[#allocation4 + $0x20] sm:$0xff]  ;;  %vm103_vm4 = vcmask 785408  }
  0x13   :  { %364 = vmatprep.subr.mxu0 %v508_v0  ;;  %v67_v12 = vld [vmem:[#allocation4 + $0x18] sm:$0xff]  ;;  %v66_v13 = vld [vmem:[#allocation4 + $0x10] sm:$0xff]  ;;  %v65_v14 = vld [vmem:[#allocation4 + $0x8] sm:$0xff]  ;;  %s512_s20 = smov 96  }
  0x14   :  { %365 = vmatpush3.msra.mxu0 %v74_v4  ;;  %v64_v15 = vld [vmem:[#allocation4] sm:$0xff]  ;;  %v84_v17 = vld [vmem:[%s656_s0] sm:$0x3]  ;;  %v80_v38 = vld [vmem:[%s664_s8 + $0x18] sm:$0xff] }
  0x15   :  { %366 = vmatprep.subr.mxu0 %v508_v0  ;;  %v61_v21 = vld [vmem:[%s658_s2] sm:$0x3]  ;;  %v79_v39 = vld [vmem:[%s664_s8 + $0x10] sm:$0xff]  ;;  %390 = vmatpush3.msra.mxu1 %v80_v38  ;;  %v78_v40 = vld [vmem:[%s664_s8 + $0x8] sm:$0xff] }
  0x16   :  { %367 = vmatpush3.msra.mxu0 %v73_v5  ;;  %62 = vst.msk [vmem:[#allocation3] sm:$0x3] %vm59_vm1, %v61_v21  ;;  %v339_v22 = vld [vmem:[%s663_s7] ss:$0 sm:$0xff]  ;;  %391 = vmatprep.subr.mxu1 %v508_v0 }
  0x17   :  { %368 = vmatprep.subr.mxu0 %v508_v0  ;;  %392 = vmatpush3.msra.mxu1 %v79_v39  ;;  %v77_v41 = vld [vmem:[%s664_s8] sm:$0xff]  ;;  %s513_s8 = smov [#allocation8]  }
  0x18   :  { %369 = vmatpush3.msra.mxu0 %v72_v6  ;;  %393 = vmatprep.subr.mxu1 %v508_v0  ;;  %s313_s21 = sshll.u32 %s513_s8, 4  ;;  %s314_s21 = int_to_ptr.vmem [resolvable:$true] %s313_s21 }
  0x19   :  { %v82_v8 = vld [vmem:[#allocation2] sm:$0x3]  ;;  %370 = vmatprep.subr.mxu0 %v508_v0  ;;  %394 = vmatpush3.msra.mxu1 %v78_v40  ;;  %s439_s22 = scalar_lea.vmem %s314_s21, 32  ;;  %p444_p6 = scmp.lt.s32.totalorder %s314_s21, %s314_s21 }
  0x1a   :  { %90 = vrot.lane.b32.xlu0 %v82_v8, %s511_s1  ;;  %371 = vmatpush3.msra.mxu0 %v71_v7  ;;  %p440_p5 = scmp.ne.s32.totalorder %s314_s21, %s439_s22  ;;  %p445_p7 = scmp.lt.s32.totalorder %s439_s22, %s439_s22 }
  0x1b   :  { %372 = vmatprep.subr.mxu0 %v508_v0  ;;  %395 = vmatprep.subr.mxu1 %v508_v0 }
  0x1c   :  { %373 = vmatpush3.msra.mxu0 %v70_v9  ;;  %396 = vmatpush3.msra.mxu1 %v77_v41  ;;  %p446_p8 = por %p445_p7, %p444_p6 }
  0x1d   :  { %374 = vmatprep.subr.mxu0 %v508_v0  ;;  %v83_v27 = vld [vmem:[#allocation3] sm:$0x3] }
  0x1e   :  { %375 = vmatpush3.msra.mxu0 %v69_v10  ;;  %p447_p9 = pnand %p446_p8, %p440_p5 }
  0x1f   :  { %376 = vmatprep.subr.mxu0 %v508_v0 }
  0x20   :  { %377 = vmatpush3.msra.mxu0 %v68_v11 }
  0x21   :  { %378 = vmatprep.subr.mxu0 %v508_v0 }
  0x22   :  { %379 = vmatpush3.msra.mxu0 %v67_v12 }
  0x23   :  { %380 = vmatprep.subr.mxu0 %v508_v0 }
  0x24   :  { %381 = vmatpush3.msra.mxu0 %v66_v13 }
  0x25   :  { %382 = vmatprep.subr.mxu0 %v508_v0 }
  0x26   :  { %383 = vmatpush3.msra.mxu0 %v65_v14 }
  0x27   :  { %384 = vmatprep.subr.mxu0 %v508_v0 }
  0x28   :  { %385 = vmatpush3.msra.mxu0 %v64_v15 }
  0x84   :  { %v87_v16 = vpop.permute.xlu0 %86 }
  0x85   :  { %v94_v18 = vsel %vm93_vm2, %v84_v17, %v87_v16 }
  0x8c   :  { %v91_v19 = vpop.permute.xlu0 %90 }
  0x8d   :  { %v96_v20 = vsel %vm95_vm3, %v94_v18, %v91_v19 }
  0x8e   :  { %387 = vmatmul.mubr.msk.f32.vlgmr.msra.gmra.mxu0 %vm103_vm4, %v96_v20 }
 0x14e   :  { %v173_v23 = vpop.f32.mrf.mxu0 }
 0x14f   :  { %v174_v24 = vadd.f32 %v339_v22, %v173_v23 }
 0x150   :  { %v388_v25 = vpop.f32.mrf.mxu0 }
 0x151   :  { %411 = vtanh.f32 %v174_v24  ;;  %v341_v28 = vmul.f32 -1.442695, %v174_v24 }
 0x153   :  { %413 = vpow2.f32 %v341_v28 }
 0x15e   :  { %v412_v26 = vpop.eup %411 }
 0x15f   :  { %190 = vrot.lane.b32.xlu1 %v412_v26, %s511_s1 }
 0x160   :  { %v414_v29 = vpop.eup %413 }
 0x161   :  { %v180_v30 = vadd.f32 1.0, %v414_v29 }
 0x163   :  { %185 = vrot.lane.b32.xlu1 %v83_v27, %s510_s6  ;;  %415 = vrcp.f32 %v180_v30 }
 0x170   :  { %v416_v31 = vpop.eup %415 }
 0x1d1   :  { %v191_v32 = vpop.permute.xlu1 %190 }
 0x1d2   :  { %v193_v33 = vmul.f32 %v416_v31, %v191_v32 }
 0x1d4   :  { %195 = vrot.lane.b32.xlu0 %v193_v33, %s510_s6 }
 0x1d5   :  { %v186_v34 = vpop.permute.xlu1 %185 }
 0x1d6   :  { %v188_v35 = vmul.f32 %v416_v31, %v186_v34 }
 0x246   :  { %v196_v36 = vpop.permute.xlu0 %195 }
 0x247   :  { %v198_v37 = vadd.f32 %v196_v36, %v188_v35 }
 0x249   :  { %417 = vtanh.f32 %v198_v37 }
 0x256   :  { %v418_v42 = vpop.eup %417 }
 0x257   :  { %201 = vrot.lane.b32.xlu1 %v418_v42, %s511_s1 }
 0x25b   :  { %291 = vrot.lane.b32.xlu1 %v198_v37, %s512_s20 }
 0x2c9   :  { %v202_v43 = vpop.permute.xlu1 %201 }
 0x2ca   :  { %v204_v44 = vmul.f32 %v416_v31, %v202_v43 }
 0x2cc   :  { %212 = vrot.lane.b32.xlu0 %v204_v44, %s510_s6 }
 0x2cd   :  { %v292_v45 = vpop.permute.xlu1 %291 }
 0x2ce   :  { %294 = vst.msk [vmem:[#allocation3] sm:$0x3] %vm59_vm1, %v292_v45  ;;  %296 = vst.msk [vmem:[#allocation10] sm:$0x3] %vm59_vm1, %v292_v45 }
 0x33e   :  { %v213_v46 = vpop.permute.xlu0 %212 }
 0x33f   :  { %289 = vst.msk [vmem:[#allocation2] sm:$0x3] %vm59_vm1, %v213_v46  ;;  %295 = vst.msk [vmem:[#allocation8] sm:$0x3] %vm59_vm1, %v213_v46  ;;  %398 = vmatmul.mubr.msk.f32.vlgmr.msra.gmra.mxu1 %vm93_vm2, %v213_v46 }
 0x340   :  { %450 = shalt.err (!%p447_p9)
}
 0x341   :  { %316 = dma.vmem_to_hbm [thread:$0]  %s314_s21, 32, %s667_s11, [#allocation9]  }
 0x342   :  { %s514_s25 = smov [#allocation10]  }
 0x343   :  { %s323_s26 = sshll.u32 %s514_s25, 4  ;;  %s324_s26 = int_to_ptr.vmem [resolvable:$true] %s323_s26 }
 0x344   :  { %s459_s27 = scalar_lea.vmem %s324_s26, 32  ;;  %p464_p11 = scmp.lt.s32.totalorder %s324_s26, %s324_s26 }
 0x345   :  { %p460_p10 = scmp.ne.s32.totalorder %s324_s26, %s459_s27  ;;  %p465_p12 = scmp.lt.s32.totalorder %s459_s27, %s459_s27 }
 0x347   :  { %p466_p13 = por %p465_p12, %p464_p11 }
 0x349   :  { %p467_p0 = pnand %p466_p13, %p460_p10 }
 0x34b   :  { %470 = shalt.err (!%p467_p0)
}
 0x34c   :  { %326 = dma.vmem_to_hbm [thread:$0]  %s324_s26, 32, %s668_s12, [#allocation9]   ;;  %v342_v47 = vld [vmem:[%s665_s9] ss:$0 sm:$0xff] }
 0x34d   :  { %s515_s3 = smov [#allocation7]  }
 0x34e   :  { %s303_s11 = sshll.u32 %s515_s3, 4  ;;  %s304_s11 = int_to_ptr.vmem [resolvable:$true] %s303_s11 }
 0x34f   :  { %s479_s30 = scalar_lea.vmem %s304_s11, 32  ;;  %p484_p2 = scmp.lt.s32.totalorder %s304_s11, %s304_s11 }
 0x350   :  { %p480_p1 = scmp.ne.s32.totalorder %s304_s11, %s479_s30  ;;  %p485_p3 = scmp.lt.s32.totalorder %s479_s30, %s479_s30 }
 0x352   :  { %p486_p4 = por %p485_p3, %p484_p2 }
 0x354   :  { %p487_p5 = pnand %p486_p4, %p480_p1 }
 0x3ff   :  { %v282_v48 = vpop.f32.mrf.mxu1 }
 0x400   :  { %v283_v49 = vadd.f32 %v342_v47, %v282_v48 }
 0x401   :  { %v399_v50 = vpop.f32.mrf.mxu1 }
 0x402   :  { %286 = vst [vmem:[#allocation7] sm:$0x3] %v283_v49 }
 0x403   :  { %490 = shalt.err (!%p487_p5)
}
 0x404   :  { %306 = dma.vmem_to_hbm [thread:$0]  %s304_s11, 32, %s666_s10, [#allocation6]  }
 0x405   :  { %501 = dma.done.wait [#allocation6], 32  }
 0x406   :  { %502 = vsyncadd [#allocation6], 4294967264 }
 0x407   :  { %503 = dma.done.wait [#allocation9], 64  }
 0x408   :  { %504 = vsyncadd [#allocation9], 4294967232 }
 0x409   :  { %336 = vsyncpa [#allocation5], 1 }
 0x40a   :  { %337 = vsyncpa [#allocation6], 1 }
 0x40b   :  { %338 = vsyncpa [#allocation9], 1 }

</bundles_post_ra>
